<compile_context>
chip_gen: v6e
topology: v6e:2x2x1
jax: 0.10.0
libtpu: 0.0.40
codegen_flags: <defaults>
</compile_context>

<pallas_src>
import jax
import jax.numpy as jnp
from jax.experimental import pallas as pl
from jax.experimental.pallas import tpu as pltpu


_DEFAULT_TM = 1024                 # preferred rows per tile (multiple of 128)
_MAX_TILE_BYTES = 2 * 1024 * 1024  # per-buffer VMEM budget for the x tile
_FAST_PATH_ELEMS = 65536           # below this many elements, plain XLA wins


def _round_up(x, n):
    return ((x + n - 1) // n) * n


def _glm_kernel(x_ref, w_ref, o_ref):
    # x_ref: (TM, F) feature rows (sublanes = rows, lanes = features)
    # w_ref: (1, F)  lane-dense weight row, resident for the whole grid
    # o_ref: (1, TM) lane-dense output slab for this row tile
    #
    # (1, F) contracted with (TM, F) over F -> (1, TM): the reduction output
    # lands on the lane axis, so the store and per-tile writeback DMA are
    # dense. Output element j depends only on row j of x_ref, so garbage in
    # the out-of-bounds tail of a partial last block never contaminates the
    # in-bounds results (and Pallas drops the out-of-bounds stores).
    o_ref[...] = jax.lax.dot_general(
        w_ref[...],
        x_ref[...],
        dimension_numbers=(((1,), (1,)), ((), ())),
        preferred_element_type=jnp.float32,
    ).astype(o_ref.dtype)


def fenchel_young_glm(features, weight, *, tile_m=_DEFAULT_TM):
    """features: (..., n_features); weight: (1, n_features).

    Returns theta of shape features.shape[:-1] (last dim squeezed), matching
    the PyTorch module's forward (nn.Linear(n_features, 1, bias=False)).
    """
    features = features.astype(weight.dtype)
    lead_shape = features.shape[:-1]
    n_features = features.shape[-1]

    x2d = features.reshape(-1, n_features)          # (M, F)
    m = x2d.shape[0]

    # Tiny-shape fast path: the whole problem fits in a couple of vregs and
    # the pallas_call launch + per-step overhead dominates.
    if m == 0 or m * n_features < _FAST_PATH_ELEMS:
        return (x2d @ weight.T)[:, 0].reshape(lead_shape)

    # VMEM-budget-aware row tile. Lanes pad F up to a multiple of 128 inside
    # VMEM, so budget against the padded width.
    itemsize = jnp.dtype(weight.dtype).itemsize
    f_padded = _round_up(n_features, 128)
    tm_budget = max(128, (_MAX_TILE_BYTES // (f_padded * itemsize)) // 128 * 128)
    tm = min(tile_m, tm_budget)

    if tm >= m:
        # Single block: block shape equals the full array dims, so no
        # (8,128) divisibility requirement and no padding of any kind.
        tm = m
        num_tiles = 1
    else:
        # Multi-tile: tm is a multiple of 128 (lane-aligned output blocks,
        # sublane-aligned input blocks). Partial last block handled by Pallas.
        num_tiles = pl.cdiv(m, tm)

    w_row = weight.reshape(1, n_features)           # lane-dense weight

    out = pl.pallas_call(
        _glm_kernel,
        out_shape=jax.ShapeDtypeStruct((1, m), weight.dtype),
        grid_spec=pltpu.PrefetchScalarGridSpec(
            num_scalar_prefetch=0,
            grid=(num_tiles,),
            in_specs=[
                pl.BlockSpec((tm, n_features), lambda i: (i, 0)),   # streamed
                pl.BlockSpec((1, n_features), lambda i: (0, 0)),    # resident
            ],
            out_specs=pl.BlockSpec((1, tm), lambda i: (0, i)),      # lane-dense
        ),
        compiler_params=pltpu.CompilerParams(
            dimension_semantics=("parallel",),   # shard across TCs on v7x
        ),
    )(x2d, w_row)

    return out.reshape(lead_shape)                  # squeeze(-1)


if __name__ == "__main__":
    key = jax.random.PRNGKey(0)
    k_x1, k_x2, k_w = jax.random.split(key, 3)

    n_features = 32
    # nn.Linear default init ~ U(-1/sqrt(F), 1/sqrt(F)); emulate deterministically.
    bound = 1.0 / jnp.sqrt(jnp.float32(n_features))
    weight = jax.random.uniform(
        k_w, (1, n_features), dtype=jnp.float32, minval=-bound, maxval=bound
    )

    # 1) Small module-shaped input (batch=2, n_items=8): XLA fast path.
    feats_small = jax.random.normal(k_x1, (2, 8, n_features), dtype=jnp.float32)
    theta_small = jax.block_until_ready(fenchel_young_glm(feats_small, weight))
    ref_small = (feats_small @ weight.T)[..., 0]
    assert theta_small.shape == (2, 8), theta_small.shape
    assert jnp.allclose(theta_small, ref_small, atol=1e-5, rtol=1e-5)

    # 2) Larger input that exercises the tiled Pallas kernel: multi-tile grid
    #    with M = 5100 not a multiple of the 1024-row tile (partial last block,
    #    no host-side padding copy).
    feats_big = jax.random.normal(k_x2, (3, 1700, n_features), dtype=jnp.float32)
    theta_big = jax.block_until_ready(fenchel_young_glm(feats_big, weight))
    ref_big = (feats_big @ weight.T)[..., 0]
    assert theta_big.shape == (3, 1700), theta_big.shape
    assert jnp.allclose(theta_big, ref_big, atol=1e-4, rtol=1e-4)

    print("KERNEL_OK")
</pallas_src>

<mosaic_0001>
module attributes {stable_mosaic.version = 11 : i64} {
  func.func @_glm_kernel(%arg0: i32, %arg1: memref<1024x32xf32, #tpu.memory_space<vmem>>, %arg2: memref<1x32xf32, #tpu.memory_space<vmem>>, %arg3: memref<1x1024xf32, #tpu.memory_space<vmem>>) attributes {dimension_semantics = [#tpu.dimension_semantics<parallel>], iteration_bounds = array<i64: 5>, scalar_prefetch = 0 : i64, scratch_operands = 0 : i64, tpu.core_type = #tpu.core_type<tc>, window_params = [{transform_indices = @transform_0, window_bounds = array<i64: 1024, 32>}, {pipeline_mode = #tpu.pipeline_mode<synchronous>, transform_indices = @transform_1, window_bounds = array<i64: 1, 32>}, {transform_indices = @transform_2, window_bounds = array<i64: 1, 1024>}]} {
    %c0 = arith.constant 0 : index
    %c0_0 = arith.constant 0 : index
    %0 = vector.load %arg2[%c0, %c0_0] : memref<1x32xf32, #tpu.memory_space<vmem>>, vector<1x32xf32>
    %c0_1 = arith.constant 0 : index
    %c0_2 = arith.constant 0 : index
    %1 = vector.load %arg1[%c0_1, %c0_2] : memref<1024x32xf32, #tpu.memory_space<vmem>>, vector<1024x32xf32>
    %cst = arith.constant dense<0.000000e+00> : vector<1x1024xf32>
    %2 = tpu.matmul %0, %1, %cst {dimension_numbers = #tpu.dot_dimension_numbers<[1], [1], [0], [0], [0, 0, 1, 0], [], []>} : vector<1x32xf32>, vector<1024x32xf32>, vector<1x1024xf32> -> vector<1x1024xf32>
    %c0_3 = arith.constant 0 : index
    %c0_4 = arith.constant 0 : index
    %3 = vector.load %arg3[%c0_3, %c0_4] : memref<1x1024xf32, #tpu.memory_space<vmem>>, vector<1x1024xf32>
    tpu.vector_store %arg3[%c0_3, %c0_4], %2 {strides = array<i32>} : memref<1x1024xf32, #tpu.memory_space<vmem>>, vector<1x1024xf32>,
    return
  }
  func.func @transform_0(%arg0: i32) -> (i32, i32) {
    %c0_i32 = arith.constant 0 : i32
    %c0_i32_0 = arith.constant 0 : i32
    return %arg0, %c0_i32 : i32, i32
  }
  func.func @transform_1(%arg0: i32) -> (i32, i32) {
    %c0_i32 = arith.constant 0 : i32
    %c0_i32_0 = arith.constant 0 : i32
    %c0_i32_1 = arith.constant 0 : i32
    return %c0_i32, %c0_i32_0 : i32, i32
  }
  func.func @transform_2(%arg0: i32) -> (i32, i32) {
    %c0_i32 = arith.constant 0 : i32
    %c0_i32_0 = arith.constant 0 : i32
    return %c0_i32, %arg0 : i32, i32
  }
}

</mosaic_0001>

<bundles_post_ra>
// kernel: tpu_custom_call.1
= control target key start
LH: loop header
LB: loop body
LE: loop exit
PB: predicated region body
PF: predicated region fallthrough
CT: control target
= control target key end

     0   :  { %7 = vsyncpa [#allocation3], 0  ;;  %s1864_s0 = inlined_call_operand.vmem [shape: f32[5100,32], index: 0, kind: input, shape index: {}]   ;;  %s1865_s1 = inlined_call_operand.vmem [shape: f32[1,32], index: 1, kind: input, shape index: {}]   ;;  %s1866_s2 = inlined_call_operand.hbm [shape: f32[1,5100], index: 2, kind: output, shape index: {}]  }
   0x1   :  { %9 = vsyncpa [#allocation3 + $0x1], 0  ;;  %s1499_s9 = smov 0   ;;  %s1501_s10 = smov 0  }
   0x2   :  { %s1503_s11 = smov 0   ;;  %s1505_s12 = smov 0  }
   0x3 LB: > { %s1098_s13 = sadd.s32 4294967295, %s1480_s12   ;;  %s1099_s14 = sadd.s32 4294967294, %s1480_s12   ;;  %s1480_s12 = sphi %s1505_s12, %s1872_s12   ;;  %s1476_s11 = sphi %s1503_s11, %s1871_s11   ;;  %s1472_s10 = sphi %s1501_s10, %s1870_s10   ;;  %s1468_s9 = sphi %s1499_s9, %s1869_s9  }
   0x4   : > { %s1522_s15 = sadd.s32 1, %s1480_s12   ;;  %s69_s16 = sadd.s32 1, %s1476_s11 }
   0x5   : > { %s66_s17 = ssub.s32 %s1480_s12, %s1522_s15  ;;  %p79_p0 = scmp.ne.s32.totalorder %s1476_s11, %s1472_s10 }
   0x6   : > { %p67_p1 = scmp.eq.s32.totalorder %s66_s17, 0  ;;  %p80_p2 = scmp.eq.s32.totalorder %s1098_s13, 4 }
   0x7   : > { %p85_p3 = scmp.ne.s32.totalorder %s1472_s10, %s1468_s9  ;;  %p86_p4 = scmp.eq.s32.totalorder %s1099_s14, 4 }
   0x8   : > { %s1532_s18 = scalar_select %p67_p1, %s1476_s11, %s69_s16  }
   0x9   : > { %p1534_p5 = por %p80_p2, %p79_p0  ;;  %p1538_p6 = por %p86_p4, %p85_p3 }
   0xa   : > { %p1102_p7 = scmp.ge.s32.totalorder %s1480_s12, 1  ;;  %p124_p8 = scmp.lt.s32.totalorder %s1480_s12, 6 }
   0xc   : > { %p125_p9 = pnand %p1102_p7, %p124_p8 }
   0xd   : > { %s1544_s21 = sshll.u32 (!%p125_p9), %s1098_s13, 7  ;;  %s147_s29 = sand.u32 (!%p125_p9), 1, %s1472_s10  }
   0xe   : > { %128 = sbr.rel (%p125_p9) target bundleno = 372 (0x174), region = 28  ;;  %p155_p10 = scmp.lt.s32.totalorder (!%p125_p9), %s1544_s21, 637 }
   0xf   : > { %s1103_s30 = sshll.u32 (!%p125_p9), %s147_s29, 3  ;;  %s1038_s7 = scalar_lea.hbm (!%p125_p9), %s1866_s2, %s1544_s21 }
  0x10   : > { %s149_s3 = scalar_lea.vmem (!%p125_p9), [#allocation2], %s1103_s30  ;;  %s1026_s8 = scalar_lea.sflag (!%p125_p9), [#allocation3], %s147_s29 }
  0x11   : > { %s1040_s4 = sshll.u32 (!%p125_p9), %s149_s3, 4  ;;  %s1483_s14 = smov (!%p125_p9), [#allocation2]   ;;  %s1041_s4 = int_to_ptr.vmem [resolvable:$true] %s1040_s4 }
  0x12   : > { %s1420_s13 = scalar_lea.vmem (!%p125_p9), %s1041_s4, 128  ;;  %s1424_s16 = sshll.u32 (!%p125_p9), %s1483_s14, 4  ;;  %s1425_s16 = int_to_ptr.vmem [resolvable:$false] %s1424_s16 }
  0x13   : > { %vm294_vm0 = vcmask 261120   ;;  %v1549_v0 = vld [vmem:[%s1865_s1] sm:$0x1]  ;;  %s156_s24 = scalar_select %p155_p10, %s1544_s21, 637 }
  0x14   : > { %1276 = vmatprep.mubr.msk.f32.mxu0 %vm294_vm0, %v1549_v0  ;;  %1310 = vmatprep.mubr.msk.f32.mxu1 %vm294_vm0, %v1549_v0  ;;  %p1421_p11 = scmp.ne.s32.totalorder %s1041_s4, %s1420_s13  ;;  %s1426_s17 = scalar_lea.vmem %s1425_s16, 256 }
  0x15   : > { %s1105_s25 = sshll.u32 %s156_s24, 3  ;;  %p1427_p0 = scmp.lt.s32.totalorder %s1041_s4, %s1425_s16 }
  0x16   : > { %s1560_s28 = scalar_lea.vmem %s1864_s0, %s1105_s25  ;;  %p1422_p12 = pnand %p1421_p11, %p1534_p5 }
  0x17   : > { %v197_v1 = vld [vmem:[%s1560_s28 + $0xf8] sm:$0xff]  ;;  %v196_v5 = vld [vmem:[%s1560_s28 + $0xf0] sm:$0xff]  ;;  %v195_v9 = vld [vmem:[%s1560_s28 + $0xe8] sm:$0xff]  ;;  %p1428_p1 = scmp.lt.s32.totalorder %s1426_s17, %s1420_s13 }
  0x18   : > { %v229_v2 = vld [vmem:[%s1560_s28 + $0x1f8] sm:$0xff]  ;;  %1244 = vmatprep.subr.msk.mxu0 %vm294_vm0, %v197_v1  ;;  %v228_v6 = vld [vmem:[%s1560_s28 + $0x1f0] sm:$0xff]  ;;  %v227_v10 = vld [vmem:[%s1560_s28 + $0x1e8] sm:$0xff]  ;;  %p1423_p13 = pneg %p1422_p12 }
  0x19   : > { %v181_v3 = vld [vmem:[%s1560_s28 + $0x78] sm:$0xff]  ;;  %1278 = vmatprep.subr.msk.mxu1 %vm294_vm0, %v229_v2  ;;  %v180_v7 = vld [vmem:[%s1560_s28 + $0x70] sm:$0xff]  ;;  %v179_v11 = vld [vmem:[%s1560_s28 + $0x68] sm:$0xff]  ;;  %p1429_p2 = por %p1428_p1, %p1427_p0 }
  0x1a   : > { %v213_v4 = vld [vmem:[%s1560_s28 + $0x178] sm:$0xff]  ;;  %1245 = vmatpush3.xpose.msk.msra.mxu0 %vm294_vm0, %v181_v3  ;;  %v212_v8 = vld [vmem:[%s1560_s28 + $0x170] sm:$0xff]  ;;  %v211_v12 = vld [vmem:[%s1560_s28 + $0x168] sm:$0xff] }
  0x1b   : > { %1279 = vmatpush3.xpose.msk.msra.mxu1 %vm294_vm0, %v213_v4  ;;  %1246 = vmatprep.subr.msk.mxu0 %vm294_vm0, %v196_v5  ;;  %v194_v13 = vld [vmem:[%s1560_s28 + $0xe0] sm:$0xff]  ;;  %v193_v17 = vld [vmem:[%s1560_s28 + $0xd8] sm:$0xff]  ;;  %v192_v21 = vld [vmem:[%s1560_s28 + $0xd0] sm:$0xff]  ;;  %p1430_p3 = pnand %p1429_p2, %p1423_p13 }
  0x1c   : > { %1280 = vmatprep.subr.msk.mxu1 %vm294_vm0, %v228_v6  ;;  %v226_v14 = vld [vmem:[%s1560_s28 + $0x1e0] sm:$0xff]  ;;  %v225_v18 = vld [vmem:[%s1560_s28 + $0x1d8] sm:$0xff]  ;;  %v224_v22 = vld [vmem:[%s1560_s28 + $0x1d0] sm:$0xff] }
  0x1d   : > { %v178_v15 = vld [vmem:[%s1560_s28 + $0x60] sm:$0xff]  ;;  %v177_v19 = vld [vmem:[%s1560_s28 + $0x58] sm:$0xff]  ;;  %v176_v23 = vld [vmem:[%s1560_s28 + $0x50] sm:$0xff] }
  0x1e   : > { %1247 = vmatpush3.xpose.msk.msra.mxu0 %vm294_vm0, %v180_v7  ;;  %v210_v16 = vld [vmem:[%s1560_s28 + $0x160] sm:$0xff]  ;;  %v209_v20 = vld [vmem:[%s1560_s28 + $0x158] sm:$0xff]  ;;  %v208_v24 = vld [vmem:[%s1560_s28 + $0x150] sm:$0xff] }
  0x1f   : > { %1281 = vmatpush3.xpose.msk.msra.mxu1 %vm294_vm0, %v212_v8  ;;  %1248 = vmatprep.subr.msk.mxu0 %vm294_vm0, %v195_v9  ;;  %v191_v25 = vld [vmem:[%s1560_s28 + $0xc8] sm:$0xff]  ;;  %v190_v29 = vld [vmem:[%s1560_s28 + $0xc0] sm:$0xff]  ;;  %v189_v33 = vld [vmem:[%s1560_s28 + $0xb8] sm:$0xff] }
  0x20   : > { %1282 = vmatprep.subr.msk.mxu1 %vm294_vm0, %v227_v10  ;;  %v223_v26 = vld [vmem:[%s1560_s28 + $0x1c8] sm:$0xff]  ;;  %v222_v30 = vld [vmem:[%s1560_s28 + $0x1c0] sm:$0xff]  ;;  %v221_v34 = vld [vmem:[%s1560_s28 + $0x1b8] sm:$0xff] }
  0x21   : > { %v175_v27 = vld [vmem:[%s1560_s28 + $0x48] sm:$0xff]  ;;  %v174_v31 = vld [vmem:[%s1560_s28 + $0x40] sm:$0xff]  ;;  %v173_v35 = vld [vmem:[%s1560_s28 + $0x38] sm:$0xff] }
  0x22   : > { %1249 = vmatpush3.xpose.msk.msra.mxu0 %vm294_vm0, %v179_v11  ;;  %v207_v28 = vld [vmem:[%s1560_s28 + $0x148] sm:$0xff]  ;;  %v206_v32 = vld [vmem:[%s1560_s28 + $0x140] sm:$0xff]  ;;  %v205_v36 = vld [vmem:[%s1560_s28 + $0x138] sm:$0xff] }
  0x23   : > { %1283 = vmatpush3.xpose.msk.msra.mxu1 %vm294_vm0, %v211_v12  ;;  %1250 = vmatprep.subr.msk.mxu0 %vm294_vm0, %v194_v13  ;;  %v188_v37 = vld [vmem:[%s1560_s28 + $0xb0] sm:$0xff]  ;;  %v187_v41 = vld [vmem:[%s1560_s28 + $0xa8] sm:$0xff]  ;;  %v186_v45 = vld [vmem:[%s1560_s28 + $0xa0] sm:$0xff] }
  0x24   : > { %1284 = vmatprep.subr.msk.mxu1 %vm294_vm0, %v226_v14  ;;  %v220_v38 = vld [vmem:[%s1560_s28 + $0x1b0] sm:$0xff]  ;;  %v219_v42 = vld [vmem:[%s1560_s28 + $0x1a8] sm:$0xff]  ;;  %v218_v46 = vld [vmem:[%s1560_s28 + $0x1a0] sm:$0xff] }
  0x25   : > { %v172_v39 = vld [vmem:[%s1560_s28 + $0x30] sm:$0xff]  ;;  %v171_v43 = vld [vmem:[%s1560_s28 + $0x28] sm:$0xff]  ;;  %v170_v47 = vld [vmem:[%s1560_s28 + $0x20] sm:$0xff] }
  0x26   : > { %1251 = vmatpush3.xpose.msk.msra.mxu0 %vm294_vm0, %v178_v15  ;;  %v204_v40 = vld [vmem:[%s1560_s28 + $0x130] sm:$0xff]  ;;  %v203_v44 = vld [vmem:[%s1560_s28 + $0x128] sm:$0xff]  ;;  %v202_v48 = vld [vmem:[%s1560_s28 + $0x120] sm:$0xff] }
  0x27   : > { %1285 = vmatpush3.xpose.msk.msra.mxu1 %vm294_vm0, %v210_v16  ;;  %1252 = vmatprep.subr.msk.mxu0 %vm294_vm0, %v193_v17  ;;  %v185_v49 = vld [vmem:[%s1560_s28 + $0x98] sm:$0xff]  ;;  %v184_v53 = vld [vmem:[%s1560_s28 + $0x90] sm:$0xff]  ;;  %v183_v57 = vld [vmem:[%s1560_s28 + $0x88] sm:$0xff] }
  0x28   : > { %1286 = vmatprep.subr.msk.mxu1 %vm294_vm0, %v225_v18  ;;  %v217_v50 = vld [vmem:[%s1560_s28 + $0x198] sm:$0xff]  ;;  %v216_v54 = vld [vmem:[%s1560_s28 + $0x190] sm:$0xff]  ;;  %v215_v58 = vld [vmem:[%s1560_s28 + $0x188] sm:$0xff] }
  0x29   : > { %v169_v51 = vld [vmem:[%s1560_s28 + $0x18] sm:$0xff]  ;;  %v168_v55 = vld [vmem:[%s1560_s28 + $0x10] sm:$0xff]  ;;  %v167_v59 = vld [vmem:[%s1560_s28 + $0x8] sm:$0xff] }
  0x2a   : > { %1253 = vmatpush3.xpose.msk.msra.mxu0 %vm294_vm0, %v177_v19  ;;  %v201_v52 = vld [vmem:[%s1560_s28 + $0x118] sm:$0xff]  ;;  %v200_v56 = vld [vmem:[%s1560_s28 + $0x110] sm:$0xff]  ;;  %v199_v60 = vld [vmem:[%s1560_s28 + $0x108] sm:$0xff] }
  0x2b   : > { %1287 = vmatpush3.xpose.msk.msra.mxu1 %vm294_vm0, %v209_v20  ;;  %1254 = vmatprep.subr.msk.mxu0 %vm294_vm0, %v192_v21  ;;  %v182_v61 = vld [vmem:[%s1560_s28 + $0x80] sm:$0xff]  ;;  %v261_v2 = vld [vmem:[%s1560_s28 + $0x2f8] sm:$0xff]  ;;  %v260_v6 = vld [vmem:[%s1560_s28 + $0x2f0] sm:$0xff] }
  0x2c   : > { %1288 = vmatprep.subr.msk.mxu1 %vm294_vm0, %v224_v22  ;;  %v214_v62 = vld [vmem:[%s1560_s28 + $0x180] sm:$0xff]  ;;  %v293_v3 = vld [vmem:[%s1560_s28 + $0x3f8] sm:$0xff]  ;;  %v292_v7 = vld [vmem:[%s1560_s28 + $0x3f0] sm:$0xff] }
  0x2d   : > { %v166_v63 = vld [vmem:[%s1560_s28] sm:$0xff]  ;;  %v245_v4 = vld [vmem:[%s1560_s28 + $0x278] sm:$0xff]  ;;  %v244_v8 = vld [vmem:[%s1560_s28 + $0x270] sm:$0xff] }
  0x2e   : > { %1255 = vmatpush3.xpose.msk.msra.mxu0 %vm294_vm0, %v176_v23  ;;  %v198_v1 = vld [vmem:[%s1560_s28 + $0x100] sm:$0xff]  ;;  %v277_v5 = vld [vmem:[%s1560_s28 + $0x378] sm:$0xff]  ;;  %v276_v9 = vld [vmem:[%s1560_s28 + $0x370] sm:$0xff] }
  0x2f   : > { %1289 = vmatpush3.xpose.msk.msra.mxu1 %vm294_vm0, %v208_v24  ;;  %1256 = vmatprep.subr.msk.mxu0 %vm294_vm0, %v191_v25  ;;  %v259_v10 = vld [vmem:[%s1560_s28 + $0x2e8] sm:$0xff]  ;;  %v258_v14 = vld [vmem:[%s1560_s28 + $0x2e0] sm:$0xff]  ;;  %v257_v18 = vld [vmem:[%s1560_s28 + $0x2d8] sm:$0xff] }
  0x30   : > { %1290 = vmatprep.subr.msk.mxu1 %vm294_vm0, %v223_v26  ;;  %v291_v11 = vld [vmem:[%s1560_s28 + $0x3e8] sm:$0xff]  ;;  %v290_v15 = vld [vmem:[%s1560_s28 + $0x3e0] sm:$0xff]  ;;  %v289_v19 = vld [vmem:[%s1560_s28 + $0x3d8] sm:$0xff] }
  0x31   : > { %v243_v12 = vld [vmem:[%s1560_s28 + $0x268] sm:$0xff]  ;;  %v242_v16 = vld [vmem:[%s1560_s28 + $0x260] sm:$0xff]  ;;  %v241_v20 = vld [vmem:[%s1560_s28 + $0x258] sm:$0xff] }
  0x32   : > { %1257 = vmatpush3.xpose.msk.msra.mxu0 %vm294_vm0, %v175_v27  ;;  %v275_v13 = vld [vmem:[%s1560_s28 + $0x368] sm:$0xff]  ;;  %v274_v17 = vld [vmem:[%s1560_s28 + $0x360] sm:$0xff]  ;;  %v273_v21 = vld [vmem:[%s1560_s28 + $0x358] sm:$0xff] }
  0x33   : > { %1291 = vmatpush3.xpose.msk.msra.mxu1 %vm294_vm0, %v207_v28  ;;  %1258 = vmatprep.subr.msk.mxu0 %vm294_vm0, %v190_v29  ;;  %v256_v22 = vld [vmem:[%s1560_s28 + $0x2d0] sm:$0xff]  ;;  %v255_v26 = vld [vmem:[%s1560_s28 + $0x2c8] sm:$0xff] }
  0x34   : > { %1292 = vmatprep.subr.msk.mxu1 %vm294_vm0, %v222_v30  ;;  %v288_v23 = vld [vmem:[%s1560_s28 + $0x3d0] sm:$0xff]  ;;  %v287_v27 = vld [vmem:[%s1560_s28 + $0x3c8] sm:$0xff]  ;;  %v254_v30 = vld [vmem:[%s1560_s28 + $0x2c0] sm:$0xff] }
  0x35   : > { %v240_v24 = vld [vmem:[%s1560_s28 + $0x250] sm:$0xff]  ;;  %v239_v28 = vld [vmem:[%s1560_s28 + $0x248] sm:$0xff] }
  0x36   : > { %1259 = vmatpush3.xpose.msk.msra.mxu0 %vm294_vm0, %v174_v31  ;;  %v272_v25 = vld [vmem:[%s1560_s28 + $0x350] sm:$0xff]  ;;  %v271_v29 = vld [vmem:[%s1560_s28 + $0x348] sm:$0xff]  ;;  %v286_v31 = vld [vmem:[%s1560_s28 + $0x3c0] sm:$0xff] }
  0x37   : > { %1293 = vmatpush3.xpose.msk.msra.mxu1 %vm294_vm0, %v206_v32  ;;  %1260 = vmatprep.subr.msk.mxu0 %vm294_vm0, %v189_v33  ;;  %v238_v32 = vld [vmem:[%s1560_s28 + $0x240] sm:$0xff] }
  0x38   : > { %1294 = vmatprep.subr.msk.mxu1 %vm294_vm0, %v221_v34  ;;  %v270_v33 = vld [vmem:[%s1560_s28 + $0x340] sm:$0xff]  ;;  %v253_v34 = vld [vmem:[%s1560_s28 + $0x2b8] sm:$0xff] }
  0x3a   : > { %1261 = vmatpush3.xpose.msk.msra.mxu0 %vm294_vm0, %v173_v35  ;;  %v285_v35 = vld [vmem:[%s1560_s28 + $0x3b8] sm:$0xff] }
  0x3b   : > { %1295 = vmatpush3.xpose.msk.msra.mxu1 %vm294_vm0, %v205_v36  ;;  %1262 = vmatprep.subr.msk.mxu0 %vm294_vm0, %v188_v37  ;;  %v237_v36 = vld [vmem:[%s1560_s28 + $0x238] sm:$0xff] }
  0x3c   : > { %1296 = vmatprep.subr.msk.mxu1 %vm294_vm0, %v220_v38  ;;  %v269_v37 = vld [vmem:[%s1560_s28 + $0x338] sm:$0xff]  ;;  %v252_v38 = vld [vmem:[%s1560_s28 + $0x2b0] sm:$0xff] }
  0x3e   : > { %1263 = vmatpush3.xpose.msk.msra.mxu0 %vm294_vm0, %v172_v39  ;;  %v284_v39 = vld [vmem:[%s1560_s28 + $0x3b0] sm:$0xff] }
  0x3f   : > { %1297 = vmatpush3.xpose.msk.msra.mxu1 %vm294_vm0, %v204_v40  ;;  %1264 = vmatprep.subr.msk.mxu0 %vm294_vm0, %v187_v41  ;;  %v236_v40 = vld [vmem:[%s1560_s28 + $0x230] sm:$0xff] }
  0x40   : > { %1298 = vmatprep.subr.msk.mxu1 %vm294_vm0, %v219_v42  ;;  %v268_v41 = vld [vmem:[%s1560_s28 + $0x330] sm:$0xff]  ;;  %v251_v42 = vld [vmem:[%s1560_s28 + $0x2a8] sm:$0xff] }
  0x42   : > { %1265 = vmatpush3.xpose.msk.msra.mxu0 %vm294_vm0, %v171_v43  ;;  %v283_v43 = vld [vmem:[%s1560_s28 + $0x3a8] sm:$0xff] }
  0x43   : > { %1299 = vmatpush3.xpose.msk.msra.mxu1 %vm294_vm0, %v203_v44  ;;  %1266 = vmatprep.subr.msk.mxu0 %vm294_vm0, %v186_v45  ;;  %v235_v44 = vld [vmem:[%s1560_s28 + $0x228] sm:$0xff] }
  0x44   : > { %1300 = vmatprep.subr.msk.mxu1 %vm294_vm0, %v218_v46  ;;  %v267_v45 = vld [vmem:[%s1560_s28 + $0x328] sm:$0xff]  ;;  %v250_v46 = vld [vmem:[%s1560_s28 + $0x2a0] sm:$0xff] }
  0x46   : > { %1267 = vmatpush3.xpose.msk.msra.mxu0 %vm294_vm0, %v170_v47  ;;  %v282_v47 = vld [vmem:[%s1560_s28 + $0x3a0] sm:$0xff] }
  0x47   : > { %1301 = vmatpush3.xpose.msk.msra.mxu1 %vm294_vm0, %v202_v48  ;;  %1268 = vmatprep.subr.msk.mxu0 %vm294_vm0, %v185_v49  ;;  %v234_v48 = vld [vmem:[%s1560_s28 + $0x220] sm:$0xff] }
  0x48   : > { %1302 = vmatprep.subr.msk.mxu1 %vm294_vm0, %v217_v50  ;;  %v266_v49 = vld [vmem:[%s1560_s28 + $0x320] sm:$0xff]  ;;  %v249_v50 = vld [vmem:[%s1560_s28 + $0x298] sm:$0xff] }
  0x4a   : > { %1269 = vmatpush3.xpose.msk.msra.mxu0 %vm294_vm0, %v169_v51  ;;  %v281_v51 = vld [vmem:[%s1560_s28 + $0x398] sm:$0xff] }
  0x4b   : > { %1303 = vmatpush3.xpose.msk.msra.mxu1 %vm294_vm0, %v201_v52  ;;  %1270 = vmatprep.subr.msk.mxu0 %vm294_vm0, %v184_v53  ;;  %v233_v52 = vld [vmem:[%s1560_s28 + $0x218] sm:$0xff] }
  0x4c   : > { %1304 = vmatprep.subr.msk.mxu1 %vm294_vm0, %v216_v54  ;;  %v265_v53 = vld [vmem:[%s1560_s28 + $0x318] sm:$0xff]  ;;  %v248_v54 = vld [vmem:[%s1560_s28 + $0x290] sm:$0xff] }
  0x4e   : > { %1271 = vmatpush3.xpose.msk.msra.mxu0 %vm294_vm0, %v168_v55  ;;  %v280_v55 = vld [vmem:[%s1560_s28 + $0x390] sm:$0xff] }
  0x4f   : > { %1305 = vmatpush3.xpose.msk.msra.mxu1 %vm294_vm0, %v200_v56  ;;  %1272 = vmatprep.subr.msk.mxu0 %vm294_vm0, %v183_v57  ;;  %v232_v56 = vld [vmem:[%s1560_s28 + $0x210] sm:$0xff] }
  0x50   : > { %1306 = vmatprep.subr.msk.mxu1 %vm294_vm0, %v215_v58  ;;  %v264_v57 = vld [vmem:[%s1560_s28 + $0x310] sm:$0xff]  ;;  %v247_v58 = vld [vmem:[%s1560_s28 + $0x288] sm:$0xff] }
  0x52   : > { %1273 = vmatpush3.xpose.msk.msra.mxu0 %vm294_vm0, %v167_v59  ;;  %v279_v59 = vld [vmem:[%s1560_s28 + $0x388] sm:$0xff] }
  0x53   : > { %1307 = vmatpush3.xpose.msk.msra.mxu1 %vm294_vm0, %v199_v60  ;;  %1274 = vmatprep.subr.msk.mxu0 %vm294_vm0, %v182_v61  ;;  %v231_v60 = vld [vmem:[%s1560_s28 + $0x208] sm:$0xff] }
  0x54   : > { %1308 = vmatprep.subr.msk.mxu1 %vm294_vm0, %v214_v62  ;;  %v263_v61 = vld [vmem:[%s1560_s28 + $0x308] sm:$0xff]  ;;  %v246_v62 = vld [vmem:[%s1560_s28 + $0x280] sm:$0xff] }
  0x56   : > { %1275 = vmatpush3.xpose.msk.msra.mxu0 %vm294_vm0, %v166_v63  ;;  %v278_v63 = vld [vmem:[%s1560_s28 + $0x380] sm:$0xff] }
  0x57   : > { %1309 = vmatpush3.xpose.msk.msra.mxu1 %vm294_vm0, %v198_v1  ;;  %1312 = vmatprep.subr.msk.mxu0 %vm294_vm0, %v261_v2  ;;  %v230_v1 = vld [vmem:[%s1560_s28 + $0x200] sm:$0xff] }
  0x58   : > { %1346 = vmatprep.subr.msk.mxu1 %vm294_vm0, %v293_v3  ;;  %v262_v2 = vld [vmem:[%s1560_s28 + $0x300] sm:$0xff]  ;;  %v1482_v3 = vmov 1966171168  }
  0x59   : > { %1277 = vmatmul.mubr.msk.f32.vlgmr.msra.gmra.mxu0 %vm294_vm0, %v1549_v0 }
  0x5a   : > { %1311 = vmatmul.mubr.msk.f32.vlgmr.msra.gmra.mxu1 %vm294_vm0, %v1549_v0  ;;  %1313 = vmatpush3.xpose.msk.msra.mxu0 %vm294_vm0, %v245_v4  ;;  %v979_v4 = vunpack.c.l.s4 %v1482_v3 }
  0x5b   : > { %1347 = vmatpush3.xpose.msk.msra.mxu1 %vm294_vm0, %v277_v5  ;;  %1314 = vmatprep.subr.msk.mxu0 %vm294_vm0, %v260_v6  ;;  %v981_v5 = vlaneseq }
  0x5c   : > { %1348 = vmatprep.subr.msk.mxu1 %vm294_vm0, %v292_v7  ;;  %1344 = vmatprep.mubr.msk.f32.mxu0 %vm294_vm0, %v1549_v0 }
  0x5d   : > { %1378 = vmatprep.mubr.msk.f32.mxu1 %vm294_vm0, %v1549_v0 }
  0x5e   : > { %1315 = vmatpush3.xpose.msk.msra.mxu0 %vm294_vm0, %v244_v8  ;;  %v980_v8 = vunpack.c.0.s8 %v979_v4 }
  0x5f   : > { %1349 = vmatpush3.xpose.msk.msra.mxu1 %vm294_vm0, %v276_v9  ;;  %1316 = vmatprep.subr.msk.mxu0 %vm294_vm0, %v259_v10  ;;  %v982_v9 = vshrl.u32 %v981_v5, 7 }
  0x60   : > { %1350 = vmatprep.subr.msk.mxu1 %vm294_vm0, %v291_v11 }
  0x62   : > { %1317 = vmatpush3.xpose.msk.msra.mxu0 %vm294_vm0, %v243_v12 }
  0x63   : > { %1351 = vmatpush3.xpose.msk.msra.mxu1 %vm294_vm0, %v275_v13  ;;  %1318 = vmatprep.subr.msk.mxu0 %vm294_vm0, %v258_v14  ;;  %v983_v13 = vsub.s32 %v980_v8, %v982_v9 }
  0x64   : > { %1352 = vmatprep.subr.msk.mxu1 %vm294_vm0, %v290_v15 }
  0x66   : > { %1319 = vmatpush3.xpose.msk.msra.mxu0 %vm294_vm0, %v242_v16 }
  0x67   : > { %1353 = vmatpush3.xpose.msk.msra.mxu1 %vm294_vm0, %v274_v17  ;;  %1320 = vmatprep.subr.msk.mxu0 %vm294_vm0, %v257_v18 }
  0x68   : > { %1354 = vmatprep.subr.msk.mxu1 %vm294_vm0, %v289_v19 }
  0x6a   : > { %1321 = vmatpush3.xpose.msk.msra.mxu0 %vm294_vm0, %v241_v20 }
  0x6b   : > { %1355 = vmatpush3.xpose.msk.msra.mxu1 %vm294_vm0, %v273_v21  ;;  %1322 = vmatprep.subr.msk.mxu0 %vm294_vm0, %v256_v22 }
  0x6c   : > { %1356 = vmatprep.subr.msk.mxu1 %vm294_vm0, %v288_v23 }
  0x6e   : > { %1323 = vmatpush3.xpose.msk.msra.mxu0 %vm294_vm0, %v240_v24 }
  0x6f   : > { %1357 = vmatpush3.xpose.msk.msra.mxu1 %vm294_vm0, %v272_v25  ;;  %1324 = vmatprep.subr.msk.mxu0 %vm294_vm0, %v255_v26 }
  0x70   : > { %1358 = vmatprep.subr.msk.mxu1 %vm294_vm0, %v287_v27 }
  0x72   : > { %1325 = vmatpush3.xpose.msk.msra.mxu0 %vm294_vm0, %v239_v28 }
  0x73   : > { %1359 = vmatpush3.xpose.msk.msra.mxu1 %vm294_vm0, %v271_v29  ;;  %1326 = vmatprep.subr.msk.mxu0 %vm294_vm0, %v254_v30 }
  0x74   : > { %1360 = vmatprep.subr.msk.mxu1 %vm294_vm0, %v286_v31 }
  0x76   : > { %1327 = vmatpush3.xpose.msk.msra.mxu0 %vm294_vm0, %v238_v32 }
  0x77   : > { %1361 = vmatpush3.xpose.msk.msra.mxu1 %vm294_vm0, %v270_v33  ;;  %1328 = vmatprep.subr.msk.mxu0 %vm294_vm0, %v253_v34 }
  0x78   : > { %1362 = vmatprep.subr.msk.mxu1 %vm294_vm0, %v285_v35 }
  0x7a   : > { %1329 = vmatpush3.xpose.msk.msra.mxu0 %vm294_vm0, %v237_v36 }
  0x7b   : > { %1363 = vmatpush3.xpose.msk.msra.mxu1 %vm294_vm0, %v269_v37  ;;  %1330 = vmatprep.subr.msk.mxu0 %vm294_vm0, %v252_v38 }
  0x7c   : > { %1364 = vmatprep.subr.msk.mxu1 %vm294_vm0, %v284_v39 }
  0x7e   : > { %1331 = vmatpush3.xpose.msk.msra.mxu0 %vm294_vm0, %v236_v40 }
  0x7f   : > { %1365 = vmatpush3.xpose.msk.msra.mxu1 %vm294_vm0, %v268_v41  ;;  %1332 = vmatprep.subr.msk.mxu0 %vm294_vm0, %v251_v42 }
  0x80   : > { %1366 = vmatprep.subr.msk.mxu1 %vm294_vm0, %v283_v43 }
  0x82   : > { %1333 = vmatpush3.xpose.msk.msra.mxu0 %vm294_vm0, %v235_v44 }
  0x83   : > { %1367 = vmatpush3.xpose.msk.msra.mxu1 %vm294_vm0, %v267_v45  ;;  %1334 = vmatprep.subr.msk.mxu0 %vm294_vm0, %v250_v46 }
  0x84   : > { %1368 = vmatprep.subr.msk.mxu1 %vm294_vm0, %v282_v47 }
  0x86   : > { %1335 = vmatpush3.xpose.msk.msra.mxu0 %vm294_vm0, %v234_v48 }
  0x87   : > { %1369 = vmatpush3.xpose.msk.msra.mxu1 %vm294_vm0, %v266_v49  ;;  %1336 = vmatprep.subr.msk.mxu0 %vm294_vm0, %v249_v50 }
  0x88   : > { %1370 = vmatprep.subr.msk.mxu1 %vm294_vm0, %v281_v51 }
  0x8a   : > { %1337 = vmatpush3.xpose.msk.msra.mxu0 %vm294_vm0, %v233_v52 }
  0x8b   : > { %1371 = vmatpush3.xpose.msk.msra.mxu1 %vm294_vm0, %v265_v53  ;;  %1338 = vmatprep.subr.msk.mxu0 %vm294_vm0, %v248_v54 }
  0x8c   : > { %1372 = vmatprep.subr.msk.mxu1 %vm294_vm0, %v280_v55 }
  0x8e   : > { %1339 = vmatpush3.xpose.msk.msra.mxu0 %vm294_vm0, %v232_v56 }
  0x8f   : > { %1373 = vmatpush3.xpose.msk.msra.mxu1 %vm294_vm0, %v264_v57  ;;  %1340 = vmatprep.subr.msk.mxu0 %vm294_vm0, %v247_v58 }
  0x90   : > { %1374 = vmatprep.subr.msk.mxu1 %vm294_vm0, %v279_v59 }
  0x92   : > { %1341 = vmatpush3.xpose.msk.msra.mxu0 %vm294_vm0, %v231_v60 }
  0x93   : > { %1375 = vmatpush3.xpose.msk.msra.mxu1 %vm294_vm0, %v263_v61  ;;  %1342 = vmatprep.subr.msk.mxu0 %vm294_vm0, %v246_v62 }
  0x94   : > { %1376 = vmatprep.subr.msk.mxu1 %vm294_vm0, %v278_v63 }
  0x96   : > { %1343 = vmatpush3.xpose.msk.msra.mxu0 %vm294_vm0, %v230_v1 }
  0x97   : > { %1377 = vmatpush3.xpose.msk.msra.mxu1 %vm294_vm0, %v262_v2 }
  0x99   : > { %1345 = vmatmul.mubr.msk.f32.vlgmr.msra.gmra.mxu0 %vm294_vm0, %v1549_v0 }
  0x9a   : > { %1379 = vmatmul.mubr.msk.f32.vlgmr.msra.gmra.mxu1 %vm294_vm0, %v1549_v0 }
 0x119   : > { %v748_v6 = vpop.f32.mrf.mxu0 }
 0x11a   : > { %v819_v7 = vpop.f32.mrf.mxu1 }
 0x11b   : > { %v750_v10 = vpop.f32.mrf.mxu0 }
 0x11c   : > { %v821_v11 = vpop.f32.mrf.mxu1  ;;  %v974_v12 = vcombine.low %v748_v6, %v750_v10 }
 0x11d   : > { %v975_v14 = vcombine.low %v819_v7, %v821_v11 }
 0x11e   : > { %v984_v17 = vrot.slane %v974_v12, %v983_v13 }
 0x11f   : > { %v991_v18 = vrot.slane %v975_v14, %v983_v13 }
 0x121   : > { %v1006_v22 = vcombine.low %v984_v17, %v991_v18 }
 0x123   : > { %v1014_v26 = vrot.slane %v1006_v22, %v983_v13 }
 0x159   : > { %v890_v15 = vpop.f32.mrf.mxu0 }
 0x15a   : > { %v961_v16 = vpop.f32.mrf.mxu1 }
 0x15b   : > { %v892_v19 = vpop.f32.mrf.mxu0 }
 0x15c   : > { %v963_v0 = vpop.f32.mrf.mxu1  ;;  %v976_v20 = vcombine.low %v890_v15, %v892_v19 }
 0x15d   : > { %v977_v21 = vcombine.low %v961_v16, %v963_v0 }
 0x15e   : > { %v998_v23 = vrot.slane %v976_v20, %v983_v13 }
 0x15f   : > { %v1005_v24 = vrot.slane %v977_v21, %v983_v13 }
 0x161   : > { %v1007_v25 = vcombine.low %v998_v23, %v1005_v24 }
 0x163   : > { %v1021_v27 = vrot.slane %v1007_v25, %v983_v13 }
 0x165   : > { %v1022_v28 = vcombine.low %v1014_v26, %v1021_v27 }
 0x167   : > { %1024 = vst [vmem:[%s149_s3] sm:$0xff] %v1022_v28 }
 0x168   : > { %1433 = shalt.err (!%p1430_p3)
}
 0x169   : > { %s1434_s22 = scalar_lea.hbm %s1038_s7, 128  ;;  %s1438_s24 = scalar_lea.hbm %s1866_s2, 640 }
 0x16a   : > { %p1435_p4 = scmp.ne.s32.totalorder %s1038_s7, %s1434_s22  ;;  %p1439_p9 = scmp.lt.s32.totalorder %s1038_s7, %s1866_s2 }
 0x16b   : > { %p1440_p10 = scmp.lt.s32.totalorder %s1438_s24, %s1434_s22 }
 0x16c   : > { %p1436_p7 = pnand %p1435_p4, %p1534_p5 }
 0x16d   : > { %p1441_p11 = por %p1440_p10, %p1439_p9 }
 0x16e   : > { %p1437_p8 = pneg %p1436_p7 }
 0x170   : > { %p1442_p12 = pnand %p1441_p11, %p1437_p8 }
 0x172   : > { %1445 = shalt.err (!%p1442_p12)
}
 0x173   : > { %1380 = dma.vmem_to_hbm [thread:$0]  (%p1534_p5), %s1041_s4, 128, %s1038_s7, %s1026_s8  }
 0x174 PF: > { %p1386_p13 = scmp.ge.s32.totalorder %s1480_s12, 2  ;;  %s1052_s27 = sand.u32 1, %s1468_s9  }
 0x175   : > { %s1053_s28 = scalar_lea.sflag [#allocation3], %s1052_s27 }
 0x176   : > { %p1383_p0 = pnand %p1386_p13, %p1538_p6 }
 0x178   : > { %p1384_p1 = pneg %p1383_p0 }
 0x17a   : > { %1463 = dma.done.wait (%p1384_p1), %s1053_s28, 128  }
 0x17b   : > { %1465 = vsyncadd (%p1384_p1), %s1053_s28, 4294967168  ;;  %p12_p2 = scmp.ge.s32.totalorder %s1522_s15, 7   ;;  %s1869_s9 = smov %s1472_s10 }
 0x17c   : > { %s1870_s10 = smov %s1476_s11  ;;  %s1871_s11 = smov %s1532_s18 }
 0x17d   : > { %s1872_s12 = smov %s1522_s15  ;;  %14 = sbr.rel (!%p12_p2) target bundleno = 3 (0x3), region = 63 }
 0x182   :  { %1058 = vsyncpa [#allocation3], 1 }
 0x183   :  { %1060 = vsyncpa [#allocation3 + $0x1], 1 }

</bundles_post_ra>
